<compile_context>
chip_gen: v5e
topology: v5e:2x2
jax: 0.10.0
libtpu: 0.0.40
codegen_flags: <defaults>
</compile_context>

<pallas_src>
import functools

import jax
import jax.numpy as jnp
from jax.experimental import pallas as pl
from jax.experimental.pallas import tpu as pltpu

LEAKY_SLOPE = 0.2
BN_EPS = 1e-5
LANE = 128


def _round_up(n, m=LANE):
    return ((n + m - 1) // m) * m


def _bn_lrelu(h, gamma, beta):
    """Training-mode BatchNorm1d (biased variance) folded into one FMA, then LeakyReLU."""
    inv_n = 1.0 / h.shape[0]
    mean = jnp.sum(h, axis=0, keepdims=True) * inv_n
    mean_sq = jnp.sum(h * h, axis=0, keepdims=True) * inv_n
    var = jnp.maximum(mean_sq - mean * mean, 0.0)   # clamp: f32 rounding can go <0
    scale = gamma * jax.lax.rsqrt(var + BN_EPS)     # per-feature scale
    shift = beta - mean * scale                     # per-feature shift
    hn = h * scale + shift                          # single FMA per element
    return jnp.maximum(hn, LEAKY_SLOPE * hn)        # LeakyReLU(0.2)


def decoder_kernel(x_ref, w1_ref, w2_ref, w3_ref, w4_ref, vec_ref, o_ref, *, segs):
    """segs: static tuple of (offset, width) into the packed per-feature slab, in
    order (g1, be1, g2, be2, g3, be3, b4)."""

    def seg(i):
        off, width = segs[i]
        return vec_ref[:, pl.ds(off, width)]        # static, lane-aligned offsets

    # Matmuls in bf16 (MXU native) with f32 accumulation; everything else f32.
    x = x_ref[...].astype(jnp.bfloat16)

    h = jnp.dot(x, w1_ref[...], preferred_element_type=jnp.float32)
    h = _bn_lrelu(h, seg(0), seg(1))

    h = jnp.dot(h.astype(jnp.bfloat16), w2_ref[...], preferred_element_type=jnp.float32)
    h = _bn_lrelu(h, seg(2), seg(3))

    h = jnp.dot(h.astype(jnp.bfloat16), w3_ref[...], preferred_element_type=jnp.float32)
    h = _bn_lrelu(h, seg(4), seg(5))

    h = jnp.dot(h.astype(jnp.bfloat16), w4_ref[...], preferred_element_type=jnp.float32)
    h = h + seg(6)                                  # final Linear bias (no BN after it)
    o_ref[...] = jnp.tanh(h)


def _pack_vectors(vecs):
    """Pack 2D (1, w) f32 vectors into one lane-padded slab; return (slab, offsets)."""
    chunks, segs, cur = [], [], 0
    for v in vecs:
        w = v.shape[-1]
        padded = _round_up(w)
        chunk = jnp.zeros((1, padded), jnp.float32).at[:, :w].set(v.reshape(1, w))
        chunks.append(chunk)
        segs.append((cur, w))
        cur += padded
    return jnp.concatenate(chunks, axis=1), tuple(segs)


def init_decoder_params(key, z_size, out_dim):
    """Deterministic params mimicking PyTorch defaults.

    Linear: weight & bias ~ U(-1/sqrt(fan_in), 1/sqrt(fan_in)).  Weights stored
    pre-transposed as (in, out) in bf16.  Biases of the first three Linears are
    omitted (cancelled exactly by training-mode BatchNorm).  BN gamma=1, beta=0.
    Returns (weights_list, packed_vector_slab, static_segment_offsets).
    """
    dims = [z_size, 2 * z_size, 4 * z_size, 8 * z_size, out_dim]
    weights, gammas, betas = [], [], []
    b4 = None
    for i in range(4):
        fan_in, fan_out = dims[i], dims[i + 1]
        key, kw, kb = jax.random.split(key, 3)
        bound = 1.0 / jnp.sqrt(jnp.float32(fan_in))
        w = jax.random.uniform(kw, (fan_in, fan_out), jnp.float32, -bound, bound)
        weights.append(w.astype(jnp.bfloat16))
        if i < 3:
            # Linear bias dropped (cancelled by BN); BatchNorm affine params kept.
            gammas.append(jnp.ones((1, fan_out), jnp.float32))
            betas.append(jnp.zeros((1, fan_out), jnp.float32))
        else:
            b4 = jax.random.uniform(kb, (1, fan_out), jnp.float32, -bound, bound)
    vec_order = [gammas[0], betas[0], gammas[1], betas[1], gammas[2], betas[2], b4]
    vec_slab, segs = _pack_vectors(vec_order)
    return weights, vec_slab, segs


def _cost_estimate(batch, z_size, out_dim, weights, vec_slab, x):
    dims = [z_size, 2 * z_size, 4 * z_size, 8 * z_size, out_dim]
    flops = 0
    for i in range(4):
        flops += 2 * batch * dims[i] * dims[i + 1]        # matmuls
    flops += 10 * batch * sum(dims[1:4])                  # BN + LeakyReLU (approx)
    transcendentals = batch * out_dim + sum(dims[1:4])    # tanh + rsqrt
    bytes_accessed = x.size * x.dtype.itemsize
    for p in weights:
        bytes_accessed += p.size * p.dtype.itemsize
    bytes_accessed += vec_slab.size * vec_slab.dtype.itemsize
    bytes_accessed += batch * out_dim * 4                 # f32 output
    return pl.CostEstimate(flops=flops,
                           transcendentals=transcendentals,
                           bytes_accessed=bytes_accessed)


def decoder_forward(x, weights, vec_slab, segs,
                    output_channel, output_height, output_width):
    B, z_size = x.shape
    out_dim = output_channel * output_height * output_width

    vmem_spec = pl.BlockSpec(memory_space=pltpu.MemorySpace.VMEM)
    n_inputs = 1 + len(weights) + 1                       # x, w1..w4, packed slab

    flat = pl.pallas_call(
        functools.partial(decoder_kernel, segs=segs),
        out_shape=jax.ShapeDtypeStruct((B, out_dim), jnp.float32),
        in_specs=[vmem_spec] * n_inputs,
        out_specs=vmem_spec,
        compiler_params=pltpu.CompilerParams(
            vmem_limit_bytes=32 * 1024 * 1024),
        cost_estimate=_cost_estimate(B, z_size, out_dim, weights, vec_slab, x),
    )(x, *weights, vec_slab)

    # PyTorch: .view(-1, C, H, W)  (NCHW) — pure reshape, done outside the kernel.
    return flat.reshape(B, output_channel, output_height, output_width)


if __name__ == "__main__":
    z_size = 16
    output_channel, output_height, output_width = 4, 8, 8
    batch = 8
    out_dim = output_channel * output_height * output_width

    key = jax.random.PRNGKey(0)
    key_x, key_p = jax.random.split(key)
    x = jax.random.normal(key_x, (batch, z_size), jnp.float32)
    weights, vec_slab, segs = init_decoder_params(key_p, z_size, out_dim)

    y = decoder_forward(x, weights, vec_slab, segs,
                        output_channel, output_height, output_width)
    jax.block_until_ready(y)
    assert y.shape == (batch, output_channel, output_height, output_width)
    assert bool(jnp.all(jnp.isfinite(y)))
    assert bool(jnp.all(jnp.abs(y) <= 1.0))   # tanh range sanity check
    print("KERNEL_OK")
</pallas_src>

<mosaic_0001>
module attributes {stable_mosaic.version = 11 : i64} {
  func.func @decoder_kernel(%arg0: memref<8x16xf32, #tpu.memory_space<vmem>>, %arg1: memref<16x32xbf16, #tpu.memory_space<vmem>>, %arg2: memref<32x64xbf16, #tpu.memory_space<vmem>>, %arg3: memref<64x128xbf16, #tpu.memory_space<vmem>>, %arg4: memref<128x256xbf16, #tpu.memory_space<vmem>>, %arg5: memref<1x1024xf32, #tpu.memory_space<vmem>>, %arg6: memref<8x256xf32, #tpu.memory_space<vmem>>) attributes {dimension_semantics = [], scalar_prefetch = 0 : i64, scratch_operands = 0 : i64, tpu.core_type = #tpu.core_type<tc>} {
    %c0 = arith.constant 0 : index
    %c0_0 = arith.constant 0 : index
    %0 = vector.load %arg0[%c0, %c0_0] : memref<8x16xf32, #tpu.memory_space<vmem>>, vector<8x16xf32>
    %1 = arith.truncf %0 : vector<8x16xf32> to vector<8x16xbf16>
    %c0_1 = arith.constant 0 : index
    %c0_2 = arith.constant 0 : index
    %2 = vector.load %arg1[%c0_1, %c0_2] : memref<16x32xbf16, #tpu.memory_space<vmem>>, vector<16x32xbf16>
    %cst = arith.constant dense<0.000000e+00> : vector<8x32xf32>
    %3 = tpu.matmul %1, %2, %cst {dimension_numbers = #tpu.dot_dimension_numbers<[1], [0], [0], [1], [0, 0, 1, 1], [], []>} : vector<8x16xbf16>, vector<16x32xbf16>, vector<8x32xf32> -> vector<8x32xf32>
    %c0_3 = arith.constant 0 : index
    %c0_4 = arith.constant 0 : index
    %4 = vector.load %arg5[%c0_3, %c0_4] : memref<1x1024xf32, #tpu.memory_space<vmem>>, vector<1x32xf32>
    %c0_5 = arith.constant 0 : index
    %c128 = arith.constant 128 : index
    %5 = vector.load %arg5[%c0_5, %c128] : memref<1x1024xf32, #tpu.memory_space<vmem>>, vector<1x32xf32>
    %cst_6 = arith.constant dense<0.000000e+00> : vector<32xf32>
    %6 = vector.multi_reduction <add>, %3, %cst_6 [0] : vector<8x32xf32> to vector<32xf32>
    %7 = vector.shape_cast %6 : vector<32xf32> to vector<1x32xf32>
    %cst_7 = arith.constant 1.250000e-01 : f32
    %8 = vector.broadcast %cst_7 : f32 to vector<1x32xf32>
    %9 = arith.mulf %7, %8 : vector<1x32xf32>
    %10 = arith.mulf %3, %3 : vector<8x32xf32>
    %cst_8 = arith.constant dense<0.000000e+00> : vector<32xf32>
    %11 = vector.multi_reduction <add>, %10, %cst_8 [0] : vector<8x32xf32> to vector<32xf32>
    %12 = vector.shape_cast %11 : vector<32xf32> to vector<1x32xf32>
    %cst_9 = arith.constant 1.250000e-01 : f32
    %13 = vector.broadcast %cst_9 : f32 to vector<1x32xf32>
    %14 = arith.mulf %12, %13 : vector<1x32xf32>
    %15 = arith.mulf %9, %9 : vector<1x32xf32>
    %16 = arith.subf %14, %15 : vector<1x32xf32>
    %cst_10 = arith.constant 0.000000e+00 : f32
    %17 = vector.broadcast %cst_10 : f32 to vector<1x32xf32>
    %18 = arith.maximumf %16, %17 : vector<1x32xf32>
    %cst_11 = arith.constant 9.99999974E-6 : f32
    %19 = vector.broadcast %cst_11 : f32 to vector<1x32xf32>
    %20 = arith.addf %18, %19 : vector<1x32xf32>
    %21 = math.rsqrt %20 : vector<1x32xf32>
    %22 = arith.mulf %4, %21 : vector<1x32xf32>
    %23 = arith.mulf %9, %22 : vector<1x32xf32>
    %24 = arith.subf %5, %23 : vector<1x32xf32>
    %25 = vector.broadcast %22 : vector<1x32xf32> to vector<8x32xf32>
    %26 = arith.mulf %3, %25 : vector<8x32xf32>
    %27 = vector.broadcast %24 : vector<1x32xf32> to vector<8x32xf32>
    %28 = arith.addf %26, %27 : vector<8x32xf32>
    %cst_12 = arith.constant 2.000000e-01 : f32
    %29 = vector.broadcast %cst_12 : f32 to vector<8x32xf32>
    %30 = arith.mulf %29, %28 : vector<8x32xf32>
    %31 = arith.maximumf %28, %30 : vector<8x32xf32>
    %32 = arith.truncf %31 : vector<8x32xf32> to vector<8x32xbf16>
    %c0_13 = arith.constant 0 : index
    %c0_14 = arith.constant 0 : index
    %33 = vector.load %arg2[%c0_13, %c0_14] : memref<32x64xbf16, #tpu.memory_space<vmem>>, vector<32x64xbf16>
    %cst_15 = arith.constant dense<0.000000e+00> : vector<8x64xf32>
    %34 = tpu.matmul %32, %33, %cst_15 {dimension_numbers = #tpu.dot_dimension_numbers<[1], [0], [0], [1], [0, 0, 1, 1], [], []>} : vector<8x32xbf16>, vector<32x64xbf16>, vector<8x64xf32> -> vector<8x64xf32>
    %c0_16 = arith.constant 0 : index
    %c256 = arith.constant 256 : index
    %35 = vector.load %arg5[%c0_16, %c256] : memref<1x1024xf32, #tpu.memory_space<vmem>>, vector<1x64xf32>
    %c0_17 = arith.constant 0 : index
    %c384 = arith.constant 384 : index
    %36 = vector.load %arg5[%c0_17, %c384] : memref<1x1024xf32, #tpu.memory_space<vmem>>, vector<1x64xf32>
    %cst_18 = arith.constant dense<0.000000e+00> : vector<64xf32>
    %37 = vector.multi_reduction <add>, %34, %cst_18 [0] : vector<8x64xf32> to vector<64xf32>
    %38 = vector.shape_cast %37 : vector<64xf32> to vector<1x64xf32>
    %cst_19 = arith.constant 1.250000e-01 : f32
    %39 = vector.broadcast %cst_19 : f32 to vector<1x64xf32>
    %40 = arith.mulf %38, %39 : vector<1x64xf32>
    %41 = arith.mulf %34, %34 : vector<8x64xf32>
    %cst_20 = arith.constant dense<0.000000e+00> : vector<64xf32>
    %42 = vector.multi_reduction <add>, %41, %cst_20 [0] : vector<8x64xf32> to vector<64xf32>
    %43 = vector.shape_cast %42 : vector<64xf32> to vector<1x64xf32>
    %cst_21 = arith.constant 1.250000e-01 : f32
    %44 = vector.broadcast %cst_21 : f32 to vector<1x64xf32>
    %45 = arith.mulf %43, %44 : vector<1x64xf32>
    %46 = arith.mulf %40, %40 : vector<1x64xf32>
    %47 = arith.subf %45, %46 : vector<1x64xf32>
    %cst_22 = arith.constant 0.000000e+00 : f32
    %48 = vector.broadcast %cst_22 : f32 to vector<1x64xf32>
    %49 = arith.maximumf %47, %48 : vector<1x64xf32>
    %cst_23 = arith.constant 9.99999974E-6 : f32
    %50 = vector.broadcast %cst_23 : f32 to vector<1x64xf32>
    %51 = arith.addf %49, %50 : vector<1x64xf32>
    %52 = math.rsqrt %51 : vector<1x64xf32>
    %53 = arith.mulf %35, %52 : vector<1x64xf32>
    %54 = arith.mulf %40, %53 : vector<1x64xf32>
    %55 = arith.subf %36, %54 : vector<1x64xf32>
    %56 = vector.broadcast %53 : vector<1x64xf32> to vector<8x64xf32>
    %57 = arith.mulf %34, %56 : vector<8x64xf32>
    %58 = vector.broadcast %55 : vector<1x64xf32> to vector<8x64xf32>
    %59 = arith.addf %57, %58 : vector<8x64xf32>
    %cst_24 = arith.constant 2.000000e-01 : f32
    %60 = vector.broadcast %cst_24 : f32 to vector<8x64xf32>
    %61 = arith.mulf %60, %59 : vector<8x64xf32>
    %62 = arith.maximumf %59, %61 : vector<8x64xf32>
    %63 = arith.truncf %62 : vector<8x64xf32> to vector<8x64xbf16>
    %c0_25 = arith.constant 0 : index
    %c0_26 = arith.constant 0 : index
    %64 = vector.load %arg3[%c0_25, %c0_26] : memref<64x128xbf16, #tpu.memory_space<vmem>>, vector<64x128xbf16>
    %cst_27 = arith.constant dense<0.000000e+00> : vector<8x128xf32>
    %65 = tpu.matmul %63, %64, %cst_27 {dimension_numbers = #tpu.dot_dimension_numbers<[1], [0], [0], [1], [0, 0, 1, 1], [], []>} : vector<8x64xbf16>, vector<64x128xbf16>, vector<8x128xf32> -> vector<8x128xf32>
    %c0_28 = arith.constant 0 : index
    %c512 = arith.constant 512 : index
    %66 = vector.load %arg5[%c0_28, %c512] : memref<1x1024xf32, #tpu.memory_space<vmem>>, vector<1x128xf32>
    %c0_29 = arith.constant 0 : index
    %c640 = arith.constant 640 : index
    %67 = vector.load %arg5[%c0_29, %c640] : memref<1x1024xf32, #tpu.memory_space<vmem>>, vector<1x128xf32>
    %cst_30 = arith.constant dense<0.000000e+00> : vector<128xf32>
    %68 = vector.multi_reduction <add>, %65, %cst_30 [0] : vector<8x128xf32> to vector<128xf32>
    %69 = vector.shape_cast %68 : vector<128xf32> to vector<1x128xf32>
    %cst_31 = arith.constant 1.250000e-01 : f32
    %70 = vector.broadcast %cst_31 : f32 to vector<1x128xf32>
    %71 = arith.mulf %69, %70 : vector<1x128xf32>
    %72 = arith.mulf %65, %65 : vector<8x128xf32>
    %cst_32 = arith.constant dense<0.000000e+00> : vector<128xf32>
    %73 = vector.multi_reduction <add>, %72, %cst_32 [0] : vector<8x128xf32> to vector<128xf32>
    %74 = vector.shape_cast %73 : vector<128xf32> to vector<1x128xf32>
    %cst_33 = arith.constant 1.250000e-01 : f32
    %75 = vector.broadcast %cst_33 : f32 to vector<1x128xf32>
    %76 = arith.mulf %74, %75 : vector<1x128xf32>
    %77 = arith.mulf %71, %71 : vector<1x128xf32>
    %78 = arith.subf %76, %77 : vector<1x128xf32>
    %cst_34 = arith.constant 0.000000e+00 : f32
    %79 = vector.broadcast %cst_34 : f32 to vector<1x128xf32>
    %80 = arith.maximumf %78, %79 : vector<1x128xf32>
    %cst_35 = arith.constant 9.99999974E-6 : f32
    %81 = vector.broadcast %cst_35 : f32 to vector<1x128xf32>
    %82 = arith.addf %80, %81 : vector<1x128xf32>
    %83 = math.rsqrt %82 : vector<1x128xf32>
    %84 = arith.mulf %66, %83 : vector<1x128xf32>
    %85 = arith.mulf %71, %84 : vector<1x128xf32>
    %86 = arith.subf %67, %85 : vector<1x128xf32>
    %87 = vector.broadcast %84 : vector<1x128xf32> to vector<8x128xf32>
    %88 = arith.mulf %65, %87 : vector<8x128xf32>
    %89 = vector.broadcast %86 : vector<1x128xf32> to vector<8x128xf32>
    %90 = arith.addf %88, %89 : vector<8x128xf32>
    %cst_36 = arith.constant 2.000000e-01 : f32
    %91 = vector.broadcast %cst_36 : f32 to vector<8x128xf32>
    %92 = arith.mulf %91, %90 : vector<8x128xf32>
    %93 = arith.maximumf %90, %92 : vector<8x128xf32>
    %94 = arith.truncf %93 : vector<8x128xf32> to vector<8x128xbf16>
    %c0_37 = arith.constant 0 : index
    %c0_38 = arith.constant 0 : index
    %95 = vector.load %arg4[%c0_37, %c0_38] : memref<128x256xbf16, #tpu.memory_space<vmem>>, vector<128x256xbf16>
    %cst_39 = arith.constant dense<0.000000e+00> : vector<8x256xf32>
    %96 = tpu.matmul %94, %95, %cst_39 {dimension_numbers = #tpu.dot_dimension_numbers<[1], [0], [0], [1], [0, 0, 1, 1], [], []>} : vector<8x128xbf16>, vector<128x256xbf16>, vector<8x256xf32> -> vector<8x256xf32>
    %c0_40 = arith.constant 0 : index
    %c768 = arith.constant 768 : index
    %97 = vector.load %arg5[%c0_40, %c768] : memref<1x1024xf32, #tpu.memory_space<vmem>>, vector<1x256xf32>
    %98 = vector.broadcast %97 : vector<1x256xf32> to vector<8x256xf32>
    %99 = arith.addf %96, %98 : vector<8x256xf32>
    %100 = math.tanh %99 : vector<8x256xf32>
    %c0_41 = arith.constant 0 : index
    %c0_42 = arith.constant 0 : index
    %101 = vector.load %arg6[%c0_41, %c0_42] : memref<8x256xf32, #tpu.memory_space<vmem>>, vector<8x256xf32>
    tpu.vector_store %arg6[%c0_41, %c0_42], %100 {strides = array<i32>} : memref<8x256xf32, #tpu.memory_space<vmem>>, vector<8x256xf32>,
    return
  }
}

</mosaic_0001>

<bundles_post_ra>
// kernel: tpu_custom_call.1
= control target key start
LH: loop header
LB: loop body
LE: loop exit
PB: predicated region body
PF: predicated region fallthrough
CT: control target
= control target key end

     0   :  { %11 = vsyncpa [#allocation3], 0  ;;  %s912_s0 = inlined_call_operand.hbm [shape: f32[8,16], index: 0, kind: input, shape index: {}]   ;;  %s913_s1 = inlined_call_operand.hbm [shape: bf16[16,32], index: 1, kind: input, shape index: {}]   ;;  %s914_s2 = inlined_call_operand.hbm [shape: bf16[32,64], index: 2, kind: input, shape index: {}]   ;;  %s915_s3 = inlined_call_operand.hbm [shape: bf16[64,128], index: 3, kind: input, shape index: {}]   ;;  %s916_s4 = inlined_call_operand.hbm [shape: bf16[128,256], index: 4, kind: input, shape index: {}]   ;;  %s917_s5 = inlined_call_operand.hbm [shape: f32[1,1024], index: 5, kind: input, shape index: {}]   ;;  %s918_s6 = inlined_call_operand.hbm [shape: f32[8,256], index: 6, kind: output, shape index: {}]  }
   0x1   :  { %12 = vsyncpa [#allocation6], 0 }
   0x2   :  { %13 = vsyncpa [#allocation9], 0 }
   0x3   :  { %14 = vsyncpa [#allocation12], 0  ;;  %s31_s23 = sshll.u32 %s913_s1, 4  ;;  %s32_s23 = int_to_ptr.hbm [resolvable:$true] %s31_s23 }
   0x4   :  { %15 = vsyncpa [#allocation4], 0  ;;  %s832_s24 = smov [#allocation5]   ;;  %s57_s28 = sshll.u32 %s915_s3, 4  ;;  %s58_s28 = int_to_ptr.hbm [resolvable:$true] %s57_s28 }
   0x5   :  { %s33_s25 = sshll.u32 %s832_s24, 4  ;;  %s833_s29 = smov 64   ;;  %s34_s25 = int_to_ptr.vmem [resolvable:$true] %s33_s25 }
   0x6   :  { %s834_s30 = smov 4   ;;  %s835_s7 = smov [#allocation8]  }
   0x7   :  { %39 = dma.hbm_to_vmem [thread:$0]  %s32_s23, 128, %s34_s25, [#allocation6], %s833_s29, %s833_s29, %s834_s30  }
   0x8   :  { %s59_s8 = sshll.u32 %s835_s7, 4  ;;  %s21_s11 = sshll.u32 %s912_s0, 4  ;;  %s60_s8 = int_to_ptr.vmem [resolvable:$true] %s59_s8  ;;  %s22_s11 = int_to_ptr.hbm [resolvable:$true] %s21_s11 }
   0x9   :  { %65 = dma.hbm_to_vmem [thread:$0]  %s58_s28, 512, %s60_s8, [#allocation9], %s833_s29, %s833_s29, %s834_s30  }
   0xa   :  { %s44_s13 = sshll.u32 %s914_s2, 4  ;;  %s836_s14 = smov [#allocation2]   ;;  %s45_s13 = int_to_ptr.hbm [resolvable:$true] %s44_s13 }
   0xb   :  { %s23_s15 = sshll.u32 %s836_s14, 4  ;;  %s837_s3 = smov [#allocation7]   ;;  %s24_s15 = int_to_ptr.vmem [resolvable:$true] %s23_s15 }
   0xc   :  { %26 = dma.hbm_to_vmem [thread:$0]  %s22_s11, 128, %s24_s15, [#allocation3]  }
   0xd   :  { %s46_s16 = sshll.u32 %s837_s3, 4  ;;  %s70_s19 = sshll.u32 %s916_s4, 4  ;;  %s47_s16 = int_to_ptr.vmem [resolvable:$true] %s46_s16  ;;  %s71_s19 = int_to_ptr.hbm [resolvable:$true] %s70_s19 }
   0xe   :  { %52 = dma.hbm_to_vmem [thread:$0]  %s45_s13, 256, %s47_s16, [#allocation6], %s833_s29, %s833_s29, %s834_s30  }
   0xf   :  { %s838_s0 = smov [#allocation10]   ;;  %s84_s2 = sshll.u32 %s917_s5, 4  ;;  %s85_s2 = int_to_ptr.hbm [resolvable:$true] %s84_s2 }
  0x10   :  { %s72_s20 = sshll.u32 %s838_s0, 4  ;;  %s839_s23 = smov 128   ;;  %s73_s20 = int_to_ptr.vmem [resolvable:$true] %s72_s20 }
  0x11   :  { %s840_s24 = smov 8   ;;  %s841_s25 = smov [#allocation11]  }
  0x12   :  { %78 = dma.hbm_to_vmem [thread:$0]  %s71_s19, 2048, %s73_s20, [#allocation9], %s839_s23, %s839_s23, %s840_s24  }
  0x13   :  { %s86_s26 = sshll.u32 %s841_s25, 4  ;;  %s87_s26 = int_to_ptr.vmem [resolvable:$true] %s86_s26 }
  0x14   :  { %89 = dma.hbm_to_vmem [thread:$0]  %s85_s2, 128, %s87_s26, [#allocation12]  }
  0x15   :  { %822 = dma.done.wait [#allocation3], 128  }
  0x16   :  { %823 = vsyncadd [#allocation3], 4294967168 }
  0x17   :  { %824 = dma.done.wait [#allocation6], 384  }
  0x18   :  { %825 = vsyncadd [#allocation6], 4294966912 }
  0x19   :  { %826 = dma.done.wait [#allocation9], 2560  }
  0x1a   :  { %827 = vsyncadd [#allocation9], 4294964736 }
  0x1b   :  { %828 = dma.done.wait [#allocation12], 128  }
  0x1c   :  { %829 = vsyncadd [#allocation12], 4294967168  ;;  %v610_v0 = vld [vmem:[#allocation5] sm:$0xff]  ;;  %v115_v1 = vld [vmem:[#allocation2] sm:$0xff]  ;;  %vm125_vm0 = vcmask 130048   ;;  %vm144_vm1 = vcmask 261120  }
  0x1d   :  { %v116_v2 = vpack.c.bf16 %v115_v1, %v115_v1  ;;  %136 = vmatpush.bf16.msra.mxu1 %v610_v0  ;;  %v612_v23 = vld [vmem:[#allocation7 + $0x8] sm:$0xff]  ;;  %v611_v26 = vld [vmem:[#allocation7] sm:$0xff]  ;;  %v142_v33 = vld [vmem:[#allocation11] sm:$0x1]  ;;  %vm224_vm5 = vcmask 523264   ;;  %s842_s4 = smov [#allocation13]  }
  0x1e   :  { %v143_v37 = vld [vmem:[#allocation11 + $0x1] sm:$0x1]  ;;  %v616_v47 = vld [vmem:[#allocation8 + $0x18] sm:$0xff]  ;;  %v615_v48 = vld [vmem:[#allocation8 + $0x10] sm:$0xff]  ;;  %s500_s5 = sshll.u32 %s842_s4, 4  ;;  %s502_s29 = sshll.u32 %s918_s6, 4  ;;  %s501_s5 = int_to_ptr.vmem [resolvable:$true] %s500_s5  ;;  %s503_s29 = int_to_ptr.hbm [resolvable:$true] %s502_s29 }
  0x1f   :  { %309 = vmatpush.bf16.msra.mxu2 %v616_v47  ;;  %v614_v49 = vld [vmem:[#allocation8 + $0x8] sm:$0xff]  ;;  %v613_v50 = vld [vmem:[#allocation8] sm:$0xff] }
  0x20   :  { %519 = vmatmul.msk.bf16.vlgmr.msra.gmra.mxu1 %vm125_vm0, %v116_v2 }
  0x21   :  { %215 = vmatpush.bf16.msrb.mxu1 %v612_v23 }
  0x23   :  { %310 = vmatpush.bf16.msra.mxu2 %v615_v48 }
  0x25   :  { %216 = vmatpush.bf16.msrb.mxu1 %v611_v26 }
  0x27   :  { %311 = vmatpush.bf16.msra.mxu2 %v614_v49 }
  0x2b   :  { %312 = vmatpush.bf16.msra.mxu2 %v613_v50 }
  0x9d   :  { %v138_v3 = vpop.f32.mrf.mxu1 }
  0x9e   :  { %v145_v4 = vsel %vm144_vm1, %v138_v3, 0.0  ;;  %v153_v5 = vmul.f32 %v138_v3, %v138_v3 }
  0x9f   :  { %v146_v6 = vrot.slane %v145_v4, 4 }
  0xa0   :  { %v154_v7 = vsel %vm144_vm1, %v153_v5, 0.0 }
  0xa1   :  { %v147_v8 = vadd.f32 %v146_v6, %v145_v4  ;;  %v155_v9 = vrot.slane %v154_v7, 4 }
  0xa3   :  { %v148_v10 = vrot.slane %v147_v8, 2  ;;  %v156_v11 = vadd.f32 %v155_v9, %v154_v7 }
  0xa5   :  { %v149_v12 = vadd.f32 %v148_v10, %v147_v8  ;;  %v157_v13 = vrot.slane %v156_v11, 2  ;;  %v140_v14 = vpop.f32.mrf.mxu1 }
  0xa7   :  { %v150_v15 = vrot.slane %v149_v12, 1  ;;  %v158_v16 = vadd.f32 %v157_v13, %v156_v11 }
  0xa9   :  { %v151_v17 = vadd.f32 %v150_v15, %v149_v12  ;;  %v159_v18 = vrot.slane %v158_v16, 1  ;;  %v222_v15 = vld [vmem:[#allocation11 + $0x2] sm:$0x1] }
  0xab   :  { %v152_v19 = vmul.f32 0.125, %v151_v17  ;;  %v160_v20 = vadd.f32 %v159_v18, %v158_v16 }
  0xad   :  { %v161_v21 = vmul.f32 0.125, %v160_v20  ;;  %v162_v22 = vmul.f32 %v152_v19, %v152_v19 }
  0xaf   :  { %v163_v24 = vsub.f32 %v161_v21, %v162_v22 }
  0xb1   :  { %v164_v25 = vmax.f32 %v163_v24, 0.0 }
  0xb3   :  { %v165_v27 = vadd.f32 1e-05, %v164_v25 }
  0xb5   :  { %644 = vrsqrt.f32 %v165_v27  ;;  %vm172_vm3 = vweird.f32 %v165_v27 }
  0xbb   :  { %v645_v28 = vpop.eup %644 }
  0xbc   :  { %v167_v29 = vmul.f32 %v645_v28, %v165_v27  ;;  %vm173_vm2 = vweird.f32 %v645_v28 }
  0xbd   :  { %vm174_vm4 = vmor %vm172_vm3, %vm173_vm2 }
  0xbe   :  { %v168_v30 = vmul.f32 %v645_v28, %v167_v29  ;;  %v604_v29 = vld [vmem:[#allocation10 + $0x70] sm:$0xf] }
  0xc0   :  { %v169_v31 = vmul.f32 0.5, %v168_v30  ;;  %v632_v30 = vld [vmem:[#allocation10 + $0x74] sm:$0xf0] }
  0xc2   :  { %v170_v32 = vsub.f32 1.5, %v169_v31  ;;  %v631_v31 = vld [vmem:[#allocation10 + $0x74] sm:$0xf] }
  0xc4   :  { %v171_v34 = vmul.f32 %v645_v28, %v170_v32  ;;  %v605_v32 = vor.u32 %v632_v30, %v604_v29 }
  0xc6   :  { %v175_v35 = vsel %vm174_vm4, %v645_v28, %v171_v34  ;;  %465 = vmatpush.bf16.msra.mxu3 %v605_v32 }
  0xc7   :  { %v176_v36 = vmul.f32 %v175_v35, %v142_v33  ;;  %v606_v33 = vld [vmem:[#allocation10 + $0x78] sm:$0xf0]  ;;  %v596_v35 = vld [vmem:[#allocation10 + $0x60] sm:$0xf] }
  0xc8   :  { %v609_v34 = vor.u32 %v631_v31, %v606_v33 }
  0xc9   :  { %v177_v38 = vmul.f32 %v176_v36, %v152_v19  ;;  %v180_v39 = vperm.slane %v176_v36, 0  ;;  %v223_v19 = vld [vmem:[#allocation11 + $0x3] sm:$0x1]  ;;  %v630_v36 = vld [vmem:[#allocation10 + $0x64] sm:$0xf0] }
  0xca   :  { %478 = vmatpush.bf16.msra.mxu0 %v609_v34 }
  0xcb   :  { %v178_v40 = vsub.f32 %v143_v37, %v177_v38  ;;  %v182_v41 = vmul.f32 %v180_v39, %v138_v3  ;;  %v629_v37 = vld [vmem:[#allocation10 + $0x64] sm:$0xf]  ;;  %v597_v38 = vor.u32 %v630_v36, %v596_v35  ;;  %v598_v39 = vld [vmem:[#allocation10 + $0x68] sm:$0xf0] }
  0xcd   :  { %v184_v42 = vperm.slane %v178_v40, 0  ;;  %v601_v40 = vor.u32 %v629_v37, %v598_v39  ;;  %466 = vmatpush.bf16.msra.mxu3 %v597_v38  ;;  %v318_v39 = vld [vmem:[#allocation11 + $0x4] sm:$0x1] }
  0xcf   :  { %v186_v43 = vadd.f32 %v184_v42, %v182_v41  ;;  %479 = vmatpush.bf16.msra.mxu0 %v601_v40  ;;  %v588_v41 = vld [vmem:[#allocation10 + $0x50] sm:$0xf]  ;;  %v628_v42 = vld [vmem:[#allocation10 + $0x54] sm:$0xf0] }
  0xd1   :  { %v187_v44 = vmul.f32 0.2, %v186_v43 }
  0xd3   :  { %v188_v45 = vmax.f32 %v186_v43, %v187_v44  ;;  %v627_v43 = vld [vmem:[#allocation10 + $0x54] sm:$0xf] }
  0xd5   :  { %v189_v46 = vpack.c.bf16 %v188_v45, %v188_v45  ;;  %v589_v45 = vor.u32 %v628_v42, %v588_v41 }
  0xd7   :  { %528 = vmatmul.msk.bf16.vlgmr.msrb.gmra.mxu1 %vm144_vm1, %v189_v46  ;;  %v590_v46 = vld [vmem:[#allocation10 + $0x58] sm:$0xf0]  ;;  %467 = vmatpush.bf16.msra.mxu3 %v589_v45 }
  0xd8   :  { %v593_v49 = vor.u32 %v627_v43, %v590_v46  ;;  %v319_v43 = vld [vmem:[#allocation11 + $0x5] sm:$0x1] }
  0xda   :  { %480 = vmatpush.bf16.msra.mxu0 %v593_v49 }
 0x154   :  { %v218_v51 = vpop.f32.mrf.mxu1 }
 0x155   :  { %v233_v52 = vmul.f32 %v218_v51, %v218_v51  ;;  %v225_v53 = vsel %vm224_vm5, %v218_v51, 0.0 }
 0x156   :  { %v226_v54 = vrot.slane %v225_v53, 4 }
 0x157   :  { %v234_v55 = vsel %vm224_vm5, %v233_v52, 0.0  ;;  %v580_v52 = vld [vmem:[#allocation10 + $0x40] sm:$0xf] }
 0x158   :  { %v227_v56 = vadd.f32 %v226_v54, %v225_v53  ;;  %v235_v57 = vrot.slane %v234_v55, 4  ;;  %v626_v53 = vld [vmem:[#allocation10 + $0x44] sm:$0xf0] }
 0x159   :  { %v581_v54 = vor.u32 %v626_v53, %v580_v52 }
 0x15a   :  { %v228_v58 = vrot.slane %v227_v56, 2  ;;  %v236_v59 = vadd.f32 %v235_v57, %v234_v55  ;;  %v625_v55 = vld [vmem:[#allocation10 + $0x44] sm:$0xf] }
 0x15b   :  { %468 = vmatpush.bf16.msra.mxu3 %v581_v54  ;;  %v379_v54 = vld [vmem:[#allocation11 + $0x6] sm:$0x3] }
 0x15c   :  { %v220_v60 = vpop.f32.mrf.mxu1  ;;  %v229_v61 = vadd.f32 %v228_v58, %v227_v56  ;;  %v237_v62 = vrot.slane %v236_v59, 2  ;;  %v582_v56 = vld [vmem:[#allocation10 + $0x48] sm:$0xf0] }
 0x15e   :  { %v230_v63 = vrot.slane %v229_v61, 1  ;;  %v238_v0 = vadd.f32 %v237_v62, %v236_v59  ;;  %v585_v59 = vor.u32 %v625_v55, %v582_v56  ;;  %v572_v62 = vld [vmem:[#allocation10 + $0x30] sm:$0xf]  ;;  %v382_v55 = vperm.slane %v379_v54, 1 }
 0x160   :  { %v231_v1 = vadd.f32 %v230_v63, %v229_v61  ;;  %v239_v2 = vrot.slane %v238_v0, 1  ;;  %481 = vmatpush.bf16.msra.mxu0 %v585_v59  ;;  %v624_v63 = vld [vmem:[#allocation10 + $0x34] sm:$0xf0] }
 0x162   :  { %v232_v3 = vmul.f32 0.125, %v231_v1  ;;  %v240_v4 = vadd.f32 %v239_v2, %v238_v0  ;;  %v573_v1 = vor.u32 %v624_v63, %v572_v62  ;;  %v623_v2 = vld [vmem:[#allocation10 + $0x34] sm:$0xf] }
 0x164   :  { %v241_v5 = vmul.f32 0.125, %v240_v4  ;;  %v242_v6 = vmul.f32 %v232_v3, %v232_v3  ;;  %469 = vmatpush.bf16.msra.mxu3 %v573_v1 }
 0x166   :  { %v243_v7 = vsub.f32 %v241_v5, %v242_v6 }
 0x168   :  { %v244_v8 = vmax.f32 %v243_v7, 0.0 }
 0x16a   :  { %v245_v9 = vadd.f32 1e-05, %v244_v8 }
 0x16c   :  { %646 = vrsqrt.f32 %v245_v9  ;;  %vm252_vm7 = vweird.f32 %v245_v9 }
 0x172   :  { %v647_v10 = vpop.eup %646 }
 0x173   :  { %v247_v11 = vmul.f32 %v647_v10, %v245_v9  ;;  %vm253_vm6 = vweird.f32 %v647_v10  ;;  %v564_v9 = vld [vmem:[#allocation10 + $0x20] sm:$0xf] }
 0x174   :  { %vm254_vm8 = vmor %vm252_vm7, %vm253_vm6 }
 0x175   :  { %v248_v12 = vmul.f32 %v647_v10, %v247_v11 }
 0x177   :  { %v249_v13 = vmul.f32 0.5, %v248_v12  ;;  %v621_v12 = vld [vmem:[#allocation10 + $0x24] sm:$0xf] }
 0x179   :  { %v250_v14 = vsub.f32 1.5, %v249_v13  ;;  %v566_v13 = vld [vmem:[#allocation10 + $0x28] sm:$0xf0] }
 0x17b   :  { %v251_v16 = vmul.f32 %v647_v10, %v250_v14 }
 0x17d   :  { %v255_v17 = vsel %vm254_vm8, %v647_v10, %v251_v16  ;;  %v622_v10 = vld [vmem:[#allocation10 + $0x24] sm:$0xf0]  ;;  %v569_v16 = vor.u32 %v621_v12, %v566_v13 }
 0x17e   :  { %v256_v18 = vmul.f32 %v255_v17, %v222_v15  ;;  %v565_v11 = vor.u32 %v622_v10, %v564_v9  ;;  %v556_v17 = vld [vmem:[#allocation10 + $0x10] sm:$0xf] }
 0x180   :  { %v257_v20 = vmul.f32 %v256_v18, %v232_v3  ;;  %v260_v21 = vperm.slane %v256_v18, 0  ;;  %v574_v3 = vld [vmem:[#allocation10 + $0x38] sm:$0xf0]  ;;  %v620_v18 = vld [vmem:[#allocation10 + $0x14] sm:$0xf0]  ;;  %470 = vmatpush.bf16.msra.mxu3 %v565_v11 }
 0x181   :  { %v577_v6 = vor.u32 %v623_v2, %v574_v3 }
 0x182   :  { %v258_v22 = vsub.f32 %v223_v19, %v257_v20  ;;  %v262_v23 = vmul.f32 %v260_v21, %v218_v51  ;;  %v557_v19 = vor.u32 %v620_v18, %v556_v17  ;;  %v619_v20 = vld [vmem:[#allocation10 + $0x14] sm:$0xf]  ;;  %v558_v21 = vld [vmem:[#allocation10 + $0x18] sm:$0xf0] }
 0x183   :  { %482 = vmatpush.bf16.msra.mxu0 %v577_v6 }
 0x184   :  { %v264_v24 = vperm.slane %v258_v22, 0  ;;  %471 = vmatpush.bf16.msra.mxu3 %v557_v19 }
 0x186   :  { %v266_v25 = vadd.f32 %v264_v24, %v262_v23  ;;  %v561_v24 = vor.u32 %v619_v20, %v558_v21 }
 0x187   :  { %483 = vmatpush.bf16.msra.mxu0 %v569_v16 }
 0x188   :  { %v267_v26 = vmul.f32 0.2, %v266_v25 }
 0x18a   :  { %v268_v27 = vmax.f32 %v266_v25, %v267_v26  ;;  %v548_v25 = vld [vmem:[#allocation10] sm:$0xf]  ;;  %v618_v26 = vld [vmem:[#allocation10 + $0x4] sm:$0xf0] }
 0x18b   :  { %v549_v30 = vor.u32 %v618_v26, %v548_v25  ;;  %484 = vmatpush.bf16.msra.mxu0 %v561_v24 }
 0x18c   :  { %v269_v28 = vpack.c.bf16 %v268_v27, %v268_v27  ;;  %v617_v27 = vld [vmem:[#allocation10 + $0x4] sm:$0xf] }
 0x18d   :  { %472 = vmatpush.bf16.msra.mxu3 %v549_v30 }
 0x18e   :  { %545 = vmatmul.msk.bf16.vlgmr.msra.gmra.mxu2 %vm224_vm5, %v269_v28  ;;  %v550_v28 = vld [vmem:[#allocation10 + $0x8] sm:$0xf0] }
 0x18f   :  { %v553_v32 = vor.u32 %v617_v27, %v550_v28 }
 0x191   :  { %485 = vmatpush.bf16.msra.mxu0 %v553_v32 }
 0x211   :  { %v902_v44 = vpop.f32.mrf.mxu2 }
 0x212   :  { %v320_v47 = vrot.slane %v902_v44, 4  ;;  %v327_v48 = vmul.f32 %v902_v44, %v902_v44 }
 0x214   :  { %v321_v50 = vadd.f32 %v320_v47, %v902_v44  ;;  %v328_v51 = vrot.slane %v327_v48, 4 }
 0x216   :  { %v322_v57 = vrot.slane %v321_v50, 2  ;;  %v329_v58 = vadd.f32 %v328_v51, %v327_v48 }
 0x218   :  { %v323_v60 = vadd.f32 %v322_v57, %v321_v50  ;;  %v330_v61 = vrot.slane %v329_v58, 2 }
 0x219   :  { %v316_v0 = vpop.f32.mrf.mxu2 }
 0x21a   :  { %v324_v4 = vrot.slane %v323_v60, 1  ;;  %v331_v5 = vadd.f32 %v330_v61, %v329_v58  ;;  %v381_v58 = vperm.slane %v379_v54, 0 }
 0x21c   :  { %v325_v7 = vadd.f32 %v324_v4, %v323_v60  ;;  %v332_v8 = vrot.slane %v331_v5, 1 }
 0x21e   :  { %v326_v14 = vmul.f32 0.125, %v325_v7  ;;  %v333_v15 = vadd.f32 %v332_v8, %v331_v5 }
 0x220   :  { %v334_v22 = vmul.f32 0.125, %v333_v15  ;;  %v335_v23 = vmul.f32 %v326_v14, %v326_v14 }
 0x222   :  { %v336_v29 = vsub.f32 %v334_v22, %v335_v23 }
 0x224   :  { %v337_v31 = vmax.f32 %v336_v29, 0.0 }
 0x226   :  { %v338_v33 = vadd.f32 1e-05, %v337_v31 }
 0x228   :  { %648 = vrsqrt.f32 %v338_v33  ;;  %vm345_vm10 = vweird.f32 %v338_v33 }
 0x22e   :  { %v649_v34 = vpop.eup %648 }
 0x22f   :  { %v340_v35 = vmul.f32 %v649_v34, %v338_v33  ;;  %vm346_vm9 = vweird.f32 %v649_v34 }
 0x230   :  { %vm347_vm11 = vmor %vm345_vm10, %vm346_vm9 }
 0x231   :  { %v341_v36 = vmul.f32 %v649_v34, %v340_v35 }
 0x233   :  { %v342_v37 = vmul.f32 0.5, %v341_v36 }
 0x235   :  { %v343_v38 = vsub.f32 1.5, %v342_v37 }
 0x237   :  { %v344_v40 = vmul.f32 %v649_v34, %v343_v38 }
 0x239   :  { %v348_v41 = vsel %vm347_vm11, %v649_v34, %v344_v40 }
 0x23a   :  { %v349_v42 = vmul.f32 %v348_v41, %v318_v39 }
 0x23c   :  { %v353_v45 = vperm.slane %v349_v42, 0  ;;  %v350_v46 = vmul.f32 %v349_v42, %v326_v14 }
 0x23e   :  { %v351_v47 = vsub.f32 %v319_v43, %v350_v46  ;;  %v355_v48 = vmul.f32 %v353_v45, %v902_v44 }
 0x240   :  { %v357_v49 = vperm.slane %v351_v47, 0 }
 0x242   :  { %v359_v50 = vadd.f32 %v357_v49, %v355_v48 }
 0x244   :  { %v360_v51 = vmul.f32 0.2, %v359_v50 }
 0x246   :  { %v361_v52 = vmax.f32 %v359_v50, %v360_v51 }
 0x248   :  { %v362_v53 = vpack.c.bf16 %v361_v52, %v361_v52 }
 0x24a   :  { %473 = vmatmul.bf16.vlgmr.msra.gmra.mxu3 %v362_v53  ;;  %486 = vmatmul.bf16.vlgmr.msra.gmra.mxu0 %v362_v53 }
 0x2c7   :  { %v487_v56 = vpop.f32.mrf.mxu0 }
 0x2c8   :  { %v488_v57 = vadd.f32 %v487_v56, %v382_v55 }
 0x2ca   :  { %650 = vtanh.f32 %v488_v57 }
 0x2cd   :  { %v474_v59 = vpop.f32.mrf.mxu3 }
 0x2ce   :  { %v475_v60 = vadd.f32 %v474_v59, %v381_v58 }
 0x2cf   :  { %v489_v61 = vpop.f32.mrf.mxu0 }
 0x2d0   :  { %v651_v62 = vpop.eup %650  ;;  %652 = vtanh.f32 %v475_v60 }
 0x2d1   :  { %494 = vst [vmem:[#allocation13 + $0x8] sm:$0xff] %v651_v62 }
 0x2d5   :  { %v476_v44 = vpop.f32.mrf.mxu3 }
 0x2d6   :  { %v653_v63 = vpop.eup %652 }
 0x2d7   :  { %493 = vst [vmem:[#allocation13] sm:$0xff] %v653_v63 }
 0x2d8   :  { %505 = dma.vmem_to_hbm [thread:$0]  %s501_s5, 256, %s503_s29, [#allocation4]  }
 0x2d9   :  { %830 = dma.done.wait [#allocation4], 256  }
 0x2da   :  { %831 = vsyncadd [#allocation4], 4294967040 }
 0x2db   :  { %510 = vsyncpa [#allocation3], 1 }
 0x2dc   :  { %511 = vsyncpa [#allocation6], 1 }
 0x2dd   :  { %512 = vsyncpa [#allocation9], 1 }
 0x2de   :  { %513 = vsyncpa [#allocation12], 1 }
 0x2df   :  { %514 = vsyncpa [#allocation4], 1 }

</bundles_post_ra>
